<compile_context>
chip_gen: v6e
topology: v6e:2x2x1
jax: 0.10.0
libtpu: 0.0.40
codegen_flags: <defaults>
</compile_context>

<pallas_src>
import jax
import jax.numpy as jnp
from jax.experimental import pallas as pl
from jax.experimental.pallas import tpu as pltpu

_LANE = 128
_SUBLANE = 8
# ~2 MiB per block; with double-buffered input + output this is ~8 MiB VMEM,
# comfortably under scoped-VMEM defaults on v5e / v6e / v7x.
_TARGET_BLOCK_BYTES = 2 * 1024 * 1024


def _scale_kernel(scale_ref, x_ref, o_ref):
    # scale_ref: (1,) f32 in SMEM; x_ref / o_ref: native-layout VMEM blocks.
    o_ref[...] = (x_ref[...] * scale_ref[0]).astype(o_ref.dtype)


def _round_up(v, m):
    return ((v + m - 1) // m) * m


def _cdiv(a, b):
    return -(-a // b)


def _choose_block(shape, itemsize, target_bytes):
    """Pick a block shape over the *native* array shape (no reshapes / pads)."""
    ndim = len(shape)
    sub = _SUBLANE * max(1, 4 // itemsize)        # 8 f32, 16 bf16, 32 int8
    # budget is in VMEM-footprint elements (lane/sublane padding accounted below)
    budget = max(target_bytes // itemsize, sub * _LANE)
    block = [1] * ndim

    # Last dim (lanes): multiple of 128, or the full (possibly ragged) dim.
    C = shape[-1]
    c_cap = max(_LANE, (budget // _LANE) * _LANE)
    if C % _LANE == 0:
        c_tile = min(C, c_cap)
    elif _round_up(C, _LANE) > budget:
        c_tile = c_cap                             # masked boundary on last dim
    else:
        c_tile = C                                 # full ragged last dim
    block[-1] = c_tile
    rem = max(1, budget // _round_up(c_tile, _LANE))

    # Second-to-last dim (sublanes): multiple of `sub`, or the full dim.
    if ndim >= 2:
        R = shape[-2]
        if R <= rem or R <= sub:
            r_tile = R                             # full dim (any value legal)
        else:
            r_tile = max(sub, (rem // sub) * sub)  # masked boundary on this dim
        block[-2] = r_tile
        rem = max(1, rem // _round_up(r_tile, sub))

    # Leading dims: expand with exact divisors while the block stays contiguous,
    # so no masked blocks are ever needed on leading dims.
    contiguous = block[-1] == shape[-1] and (ndim < 2 or block[-2] == shape[-2])
    for d in range(ndim - 3, -1, -1):
        if not contiguous or rem <= 1:
            break
        dim = shape[d]
        take = 1
        for cand in range(min(dim, rem), 0, -1):
            if dim % cand == 0:
                take = cand
                break
        block[d] = take
        rem = max(1, rem // take)
        if take != dim:
            contiguous = False

    grid = tuple(_cdiv(shape[d], block[d]) for d in range(ndim))
    return tuple(block), grid


def scale_forward(x, scale, *, block_target_bytes=_TARGET_BLOCK_BYTES):
    """out = x * scale, with scale a 1-element parameter (nn.Parameter([v]))."""
    orig_shape = x.shape
    dtype = x.dtype
    if x.size == 0:
        return x

    # TPU tiles the last two dims; promote 0-D / 1-D inputs to a 2-D view.
    x2 = x if x.ndim >= 2 else jnp.reshape(x, (1, max(1, x.size)))
    shape = x2.shape
    itemsize = jnp.dtype(dtype).itemsize
    block, grid = _choose_block(shape, itemsize, block_target_bytes)

    scale32 = jnp.asarray(scale, dtype=jnp.float32).reshape((1,))
    index_map = lambda *idx: idx

    out = pl.pallas_call(
        _scale_kernel,
        out_shape=jax.ShapeDtypeStruct(shape, dtype),
        grid_spec=pltpu.PrefetchScalarGridSpec(
            num_scalar_prefetch=0,
            grid=grid,
            in_specs=[
                pl.BlockSpec(memory_space=pltpu.SMEM),   # (1,) f32 scale scalar
                pl.BlockSpec(block, index_map),          # native-layout block
            ],
            out_specs=pl.BlockSpec(block, index_map),
        ),
        compiler_params=pltpu.CompilerParams(
            dimension_semantics=("parallel",) * len(grid),
            vmem_limit_bytes=32 * 1024 * 1024,
        ),
    )(scale32, x2)

    return out if out.shape == orig_shape else jnp.reshape(out, orig_shape)


def _check(x, scale, **kw):
    out = scale_forward(x, scale, **kw)
    jax.block_until_ready(out)
    assert out.shape == x.shape and out.dtype == x.dtype
    ref = (x.astype(jnp.float32) * jnp.asarray(scale, jnp.float32).reshape(())).astype(x.dtype)
    tol = 1e-6 if x.dtype == jnp.float32 else 1e-2
    assert jnp.allclose(out.astype(jnp.float32), ref.astype(jnp.float32),
                        atol=tol, rtol=tol)
    return out


if __name__ == "__main__":
    key = jax.random.PRNGKey(0)
    # Deterministic parameter init, matching Scale(init_value=0.001)
    scale = jnp.array([0.001], dtype=jnp.float32)

    # 1) NCHW input, small shapes (batch=2, channels=4, 16x16 spatial)
    x = jax.random.normal(key, (2, 4, 16, 16), dtype=jnp.float32)
    _check(x, scale)

    # 2) ragged dims -> full-dim (non-(8,128)) block path
    x2 = jax.random.normal(jax.random.PRNGKey(1), (3, 5, 7, 11), dtype=jnp.float32)
    _check(x2, scale)

    # 3) bf16 input -> dtype-aware sublane packing + cast path
    x3 = jax.random.normal(jax.random.PRNGKey(2), (2, 4, 16, 16), dtype=jnp.bfloat16)
    _check(x3, scale)

    # 4) small block target -> multi-axis grid + masked sublane boundary block
    x4 = jax.random.normal(jax.random.PRNGKey(3), (2, 3, 20, 16), dtype=jnp.float32)
    _check(x4, scale, block_target_bytes=4096)

    # 5) small block target -> lane-tiled last dim with masked boundary block
    x5 = jax.random.normal(jax.random.PRNGKey(4), (1, 1, 8, 1920), dtype=jnp.float32)
    _check(x5, scale, block_target_bytes=1024)

    # 6) 1-D input -> promoted-to-2D path
    x6 = jax.random.normal(jax.random.PRNGKey(5), (13,), dtype=jnp.float32)
    _check(x6, scale)

    print("KERNEL_OK")
</pallas_src>

<mosaic_0001>
module attributes {stable_mosaic.version = 11 : i64} {
  func.func @_scale_kernel(%arg0: i32, %arg1: i32, %arg2: i32, %arg3: i32, %arg4: memref<1xf32, #tpu.memory_space<smem>>, %arg5: memref<2x4x16x16xf32, #tpu.memory_space<vmem>>, %arg6: memref<2x4x16x16xf32, #tpu.memory_space<vmem>>) attributes {dimension_semantics = [#tpu.dimension_semantics<parallel>, #tpu.dimension_semantics<parallel>, #tpu.dimension_semantics<parallel>, #tpu.dimension_semantics<parallel>], iteration_bounds = array<i64: 1, 1, 1, 1>, scalar_prefetch = 0 : i64, scratch_operands = 0 : i64, tpu.core_type = #tpu.core_type<tc>, window_params = [{transform_indices = @transform_0, window_bounds = array<i64: 1>}, {transform_indices = @transform_1, window_bounds = array<i64: 2, 4, 16, 16>}, {transform_indices = @transform_2, window_bounds = array<i64: 2, 4, 16, 16>}]} {
    %c0 = arith.constant 0 : index
    %c0_0 = arith.constant 0 : index
    %c0_1 = arith.constant 0 : index
    %c0_2 = arith.constant 0 : index
    %0 = vector.load %arg5[%c0, %c0_0, %c0_1, %c0_2] : memref<2x4x16x16xf32, #tpu.memory_space<vmem>>, vector<2x4x16x16xf32>
    %c0_3 = arith.constant 0 : index
    %1 = memref.load %arg4[%c0_3] : memref<1xf32, #tpu.memory_space<smem>>
    %2 = vector.broadcast %1 : f32 to vector<2x4x16x16xf32>
    %3 = arith.mulf %0, %2 : vector<2x4x16x16xf32>
    %c0_4 = arith.constant 0 : index
    %c0_5 = arith.constant 0 : index
    %c0_6 = arith.constant 0 : index
    %c0_7 = arith.constant 0 : index
    %4 = vector.load %arg6[%c0_4, %c0_5, %c0_6, %c0_7] : memref<2x4x16x16xf32, #tpu.memory_space<vmem>>, vector<2x4x16x16xf32>
    tpu.vector_store %arg6[%c0_4, %c0_5, %c0_6, %c0_7], %3 {strides = array<i32>} : memref<2x4x16x16xf32, #tpu.memory_space<vmem>>, vector<2x4x16x16xf32>,
    return
  }
  func.func @transform_0(%arg0: i32, %arg1: i32, %arg2: i32, %arg3: i32) -> i32 {
    %c0_i32 = arith.constant 0 : i32
    %c0_i32_0 = arith.constant 0 : i32
    return %c0_i32 : i32
  }
  func.func @transform_1(%arg0: i32, %arg1: i32, %arg2: i32, %arg3: i32) -> (i32, i32, i32, i32) {
    %c0_i32 = arith.constant 0 : i32
    return %arg0, %arg1, %arg2, %arg3 : i32, i32, i32, i32
  }
  func.func @transform_2(%arg0: i32, %arg1: i32, %arg2: i32, %arg3: i32) -> (i32, i32, i32, i32) {
    %c0_i32 = arith.constant 0 : i32
    return %arg0, %arg1, %arg2, %arg3 : i32, i32, i32, i32
  }
}

</mosaic_0001>

<bundles_post_ra>
// kernel: tpu_custom_call.1
= control target key start
LH: loop header
LB: loop body
LE: loop exit
PB: predicated region body
PF: predicated region fallthrough
CT: control target
= control target key end

     0   :  { %8 = vsyncpa [#allocation4], 0  ;;  %s193_s0 = inlined_call_operand.<no memory space> [shape: f32[1], index: 0, kind: input, shape index: {}]   ;;  %s194_s1 = inlined_call_operand.hbm [shape: f32[2,4,16,16], index: 1, kind: input, shape index: {}]   ;;  %s195_s2 = inlined_call_operand.hbm [shape: f32[2,4,16,16], index: 2, kind: output, shape index: {}]  }
   0x1   :  { %9 = vsyncpa [#allocation5], 0  ;;  %s143_s9 = smov [#allocation3]  }
   0x2   :  { %s17_s10 = sshll.u32 %s143_s9, 4  ;;  %s18_s10 = int_to_ptr.vmem [resolvable:$true] %s17_s10 }
   0x3   :  { %s107_s11 = scalar_lea.vmem %s18_s10, 2048  ;;  %p112_p1 = scmp.lt.s32.totalorder %s18_s10, %s18_s10 }
   0x4   :  { %p108_p0 = scmp.ne.s32.totalorder %s18_s10, %s107_s11  ;;  %p113_p2 = scmp.lt.s32.totalorder %s107_s11, %s107_s11 }
   0x6   :  { %p114_p3 = por %p113_p2, %p112_p1 }
   0x8   :  { %p115_p4 = pnand %p114_p3, %p108_p0 }
   0xa   :  { %118 = shalt.err (!%p115_p4)
}
   0xb   :  { %s144_s12 = smov 128   ;;  %s145_s13 = smov 8  }
   0xc   :  { %23 = dma.hbm_to_vmem [thread:$0]  %s194_s1, 2048, %s18_s10, [#allocation4], %s144_s12, %s144_s12, %s145_s13  }
   0xd   :  { %139 = dma.done.wait [#allocation4], 2048  }
   0xe   :  { %140 = vsyncadd [#allocation4], 4294965248  ;;  %v44_v0 = vstv %s193_s0  ;;  %v27_v1 = vld [vmem:[#allocation3] sm:$0xff]  ;;  %vm61_vm0 = vcmask 130048   ;;  %v28_v2 = vld [vmem:[#allocation3 + $0x8] sm:$0xff]  ;;  %s146_s0 = smov [#allocation6]  }
   0xf   :  { %v29_v3 = vld [vmem:[#allocation3 + $0x10] sm:$0xff]  ;;  %v45_v4 = vmul.f32 %v44_v0, %v27_v1  ;;  %v46_v5 = vmul.f32 %v44_v0, %v28_v2  ;;  %v30_v7 = vld [vmem:[#allocation3 + $0x18] sm:$0xff]  ;;  %v31_v8 = vld [vmem:[#allocation3 + $0x20] sm:$0xff]  ;;  %s83_s1 = sshll.u32 %s146_s0, 4  ;;  %s84_s1 = int_to_ptr.vmem [resolvable:$true] %s83_s1 }
  0x10   :  { %v47_v6 = vmul.f32 %v44_v0, %v29_v3  ;;  %v32_v9 = vld [vmem:[#allocation3 + $0x28] sm:$0xff]  ;;  %v48_v10 = vmul.f32 %v44_v0, %v30_v7  ;;  %v49_v11 = vmul.f32 %v44_v0, %v31_v8  ;;  %v33_v13 = vld [vmem:[#allocation3 + $0x30] sm:$0xff]  ;;  %v34_v14 = vld [vmem:[#allocation3 + $0x38] sm:$0xff]  ;;  %s119_s18 = scalar_lea.vmem %s84_s1, 2048  ;;  %p124_p6 = scmp.lt.s32.totalorder %s84_s1, %s84_s1 }
  0x11   :  { %v50_v12 = vmul.f32 %v44_v0, %v32_v9  ;;  %v35_v15 = vld [vmem:[#allocation3 + $0x40] sm:$0xff]  ;;  %62 = vst.msk [vmem:[#allocation6] sm:$0xff] %vm61_vm0, %v45_v4  ;;  %63 = vst.msk [vmem:[#allocation6 + $0x8] sm:$0xff] %vm61_vm0, %v46_v5  ;;  %v51_v16 = vmul.f32 %v44_v0, %v33_v13  ;;  %v52_v17 = vmul.f32 %v44_v0, %v34_v14  ;;  %v36_v19 = vld [vmem:[#allocation3 + $0x48] sm:$0xff]  ;;  %p120_p5 = scmp.ne.s32.totalorder %s84_s1, %s119_s18  ;;  %p125_p7 = scmp.lt.s32.totalorder %s119_s18, %s119_s18 }
  0x12   :  { %64 = vst.msk [vmem:[#allocation6 + $0x10] sm:$0xff] %vm61_vm0, %v47_v6  ;;  %v53_v18 = vmul.f32 %v44_v0, %v35_v15  ;;  %v37_v20 = vld [vmem:[#allocation3 + $0x50] sm:$0xff]  ;;  %v38_v21 = vld [vmem:[#allocation3 + $0x58] sm:$0xff]  ;;  %65 = vst.msk [vmem:[#allocation6 + $0x18] sm:$0xff] %vm61_vm0, %v48_v10  ;;  %v54_v22 = vmul.f32 %v44_v0, %v36_v19 }
  0x13   :  { %66 = vst.msk [vmem:[#allocation6 + $0x20] sm:$0xff] %vm61_vm0, %v49_v11  ;;  %67 = vst.msk [vmem:[#allocation6 + $0x28] sm:$0xff] %vm61_vm0, %v50_v12  ;;  %v55_v23 = vmul.f32 %v44_v0, %v37_v20  ;;  %v56_v24 = vmul.f32 %v44_v0, %v38_v21  ;;  %v39_v25 = vld [vmem:[#allocation3 + $0x60] sm:$0xff]  ;;  %v40_v26 = vld [vmem:[#allocation3 + $0x68] sm:$0xff]  ;;  %p126_p8 = por %p125_p7, %p124_p6 }
  0x14   :  { %v41_v27 = vld [vmem:[#allocation3 + $0x70] sm:$0xff]  ;;  %68 = vst.msk [vmem:[#allocation6 + $0x30] sm:$0xff] %vm61_vm0, %v51_v16  ;;  %69 = vst.msk [vmem:[#allocation6 + $0x38] sm:$0xff] %vm61_vm0, %v52_v17  ;;  %v57_v28 = vmul.f32 %v44_v0, %v39_v25  ;;  %v58_v29 = vmul.f32 %v44_v0, %v40_v26  ;;  %v42_v31 = vld [vmem:[#allocation3 + $0x78] sm:$0xff] }
  0x15   :  { %70 = vst.msk [vmem:[#allocation6 + $0x40] sm:$0xff] %vm61_vm0, %v53_v18  ;;  %v59_v30 = vmul.f32 %v44_v0, %v41_v27  ;;  %71 = vst.msk [vmem:[#allocation6 + $0x48] sm:$0xff] %vm61_vm0, %v54_v22  ;;  %v60_v32 = vmul.f32 %v44_v0, %v42_v31  ;;  %p127_p9 = pnand %p126_p8, %p120_p5 }
  0x16   :  { %72 = vst.msk [vmem:[#allocation6 + $0x50] sm:$0xff] %vm61_vm0, %v55_v23  ;;  %73 = vst.msk [vmem:[#allocation6 + $0x58] sm:$0xff] %vm61_vm0, %v56_v24 }
  0x17   :  { %74 = vst.msk [vmem:[#allocation6 + $0x60] sm:$0xff] %vm61_vm0, %v57_v28  ;;  %75 = vst.msk [vmem:[#allocation6 + $0x68] sm:$0xff] %vm61_vm0, %v58_v29 }
  0x18   :  { %76 = vst.msk [vmem:[#allocation6 + $0x70] sm:$0xff] %vm61_vm0, %v59_v30  ;;  %77 = vst.msk [vmem:[#allocation6 + $0x78] sm:$0xff] %vm61_vm0, %v60_v32 }
  0x19   :  { %130 = shalt.err (!%p127_p9)
}
  0x1a   :  { %89 = dma.vmem_to_hbm [thread:$0]  %s84_s1, 2048, %s195_s2, [#allocation5], %s144_s12, %s144_s12, %s145_s13  }
  0x1b   :  { %141 = dma.done.wait [#allocation5], 2048  }
  0x1c   :  { %142 = vsyncadd [#allocation5], 4294965248 }
  0x1d   :  { %93 = vsyncpa [#allocation4], 1 }
  0x1e   :  { %94 = vsyncpa [#allocation5], 1 }

</bundles_post_ra>
